<compile_context>
chip_gen: v5e
topology: v5e:2x2
jax: 0.10.0
libtpu: 0.0.40
codegen_flags: <defaults>
</compile_context>

<pallas_src>
import functools
import math

import numpy as np
import jax
import jax.numpy as jnp
from jax.experimental import pallas as pl
from jax.experimental.pallas import tpu as pltpu


# ---------------------------------------------------------------------------
# Per-generation tuning (VMEM budget + default tile sizes)
# ---------------------------------------------------------------------------

def _vmem_capacity_bytes():
    """Physical VMEM per core; conservative 64 MiB if the query fails."""
    try:
        info = pltpu.get_tpu_info()
        for attr in ("vmem_capacity_bytes", "vmem_bytes", "vmem_size_bytes"):
            v = getattr(info, attr, None)
            if v:
                return int(v)
    except Exception:
        pass
    return 64 * 1024 * 1024


_VMEM_CAP = _vmem_capacity_bytes()
if _VMEM_CAP >= 120 * 1024 * 1024:          # v5e / v6e: 128 MiB physical VMEM
    VMEM_LIMIT = 96 * 1024 * 1024
    TM_DEFAULT, TN_DEFAULT, TK_DEFAULT = 512, 512, 1024
else:                                        # v7x-class (64 MiB) or unknown
    VMEM_LIMIT = 40 * 1024 * 1024
    TM_DEFAULT, TN_DEFAULT, TK_DEFAULT = 256, 256, 512


def _fit(dim, target, granularity):
    """Largest block <= target that divides `dim` and is a multiple of
    `granularity`; falls back to the full dim (always legal on TPU)."""
    t = min(target, dim)
    t = (t // granularity) * granularity
    while t >= granularity:
        if dim % t == 0:
            return t
        t -= granularity
    return dim


def _gelu(y):
    # TODO(synk): HF BERT default is exact erf-GELU; tanh approximation kept
    # for guaranteed Mosaic lowering (differs at ~1e-3 level per activation).
    c = math.sqrt(2.0 / math.pi)
    return 0.5 * y * (1.0 + jnp.tanh(c * (y + 0.044715 * y * y * y)))


# ---------------------------------------------------------------------------
# jnp reference fallbacks (used only for sub-vreg shapes)
# ---------------------------------------------------------------------------

def _linear_ref(x, w, b, activation):
    y = x.astype(jnp.float32) @ w.astype(jnp.float32) + b
    if activation == "gelu":
        y = _gelu(y)
    return y.astype(jnp.bfloat16)


def _mm_res_ln_ref(x, w, b, res, g, bt, eps):
    y = x.astype(jnp.float32) @ w.astype(jnp.float32) + b + res.astype(jnp.float32)
    mu = y.mean(-1, keepdims=True)
    var = ((y - mu) ** 2).mean(-1, keepdims=True)
    return ((y - mu) * jax.lax.rsqrt(var + eps) * g + bt).astype(jnp.bfloat16)


def _ln_ref(x, g, b, eps):
    x = x.astype(jnp.float32)
    mu = x.mean(-1, keepdims=True)
    var = ((x - mu) ** 2).mean(-1, keepdims=True)
    return ((x - mu) * jax.lax.rsqrt(var + eps) * g + b).astype(jnp.bfloat16)


def _attention_ref(qkv, mask_bias, num_heads, head_dim):
    B, S, _ = qkv.shape
    H = num_heads * head_dim

    def heads(t):
        return t.reshape(B, S, num_heads, head_dim).transpose(0, 2, 1, 3).astype(jnp.float32)

    q = heads(qkv[..., :H])
    k = heads(qkv[..., H:2 * H])
    v = heads(qkv[..., 2 * H:])
    s = jnp.einsum("bhqd,bhkd->bhqk", q, k) / math.sqrt(head_dim)
    s = s + mask_bias[:, :, None, :]
    p = jax.nn.softmax(s, axis=-1)
    o = jnp.einsum("bhqk,bhkd->bhqd", p, v)
    return o.transpose(0, 2, 1, 3).reshape(B, S, H).astype(jnp.bfloat16)


# ---------------------------------------------------------------------------
# Pallas kernels
# ---------------------------------------------------------------------------

def _linear_kernel(x_ref, w_ref, b_ref, o_ref, acc_ref, *, activation):
    """Tiled y = act(x @ w + b); bf16 MXU operands, fp32 VMEM accumulator."""
    @pl.when(pl.program_id(2) == 0)
    def _():
        acc_ref[...] = jnp.zeros_like(acc_ref)

    acc_ref[...] += jnp.dot(x_ref[...], w_ref[...],
                            preferred_element_type=jnp.float32)

    @pl.when(pl.program_id(2) == pl.num_programs(2) - 1)
    def _():
        y = acc_ref[...] + b_ref[...]
        if activation == "gelu":
            y = _gelu(y)
        o_ref[...] = y.astype(o_ref.dtype)


def linear(x, w, b, activation="none",
           tm=TM_DEFAULT, tn=TN_DEFAULT, tk=TK_DEFAULT):
    M, K = x.shape
    N = w.shape[1]
    if M < 8 or N < 128 or K < 128:
        # Sub-vreg work: a pallas_call would be pure launch/pipeline overhead.
        return _linear_ref(x, w, b, activation)
    tm = _fit(M, tm, 16)          # 16: bf16 sublane packing
    tn = _fit(N, tn, 128)
    tk = _fit(K, tk, 128)
    grid = (M // tm, N // tn, K // tk)
    return pl.pallas_call(
        functools.partial(_linear_kernel, activation=activation),
        out_shape=jax.ShapeDtypeStruct((M, N), jnp.bfloat16),
        grid=grid,
        in_specs=[
            pl.BlockSpec((tm, tk), lambda i, j, k: (i, k)),
            pl.BlockSpec((tk, tn), lambda i, j, k: (k, j)),
            pl.BlockSpec((1, tn), lambda i, j, k: (0, j)),
        ],
        out_specs=pl.BlockSpec((tm, tn), lambda i, j, k: (i, j)),
        scratch_shapes=[pltpu.VMEM((tm, tn), jnp.float32)],
        compiler_params=pltpu.CompilerParams(
            dimension_semantics=("parallel", "parallel", "arbitrary"),
            vmem_limit_bytes=VMEM_LIMIT),
    )(x.astype(jnp.bfloat16), w.astype(jnp.bfloat16),
      b.reshape(1, N).astype(jnp.float32))


def _matmul_res_ln_kernel(x_ref, w_ref, b_ref, res_ref, g_ref, bt_ref,
                          o_ref, acc_ref, *, eps):
    """Fused (x @ w + b) + residual, then LayerNorm over the hidden axis.

    bf16 MXU operands; accumulator, residual add and LN statistics in fp32.
    The hidden (output) axis is untiled so the LN reduction sees the full row;
    the contraction axis K is tiled via the second grid axis.
    """
    @pl.when(pl.program_id(1) == 0)
    def _():
        acc_ref[...] = jnp.zeros_like(acc_ref)

    acc_ref[...] += jnp.dot(x_ref[...], w_ref[...],
                            preferred_element_type=jnp.float32)

    @pl.when(pl.program_id(1) == pl.num_programs(1) - 1)
    def _():
        y = acc_ref[...] + b_ref[...] + res_ref[...].astype(jnp.float32)
        mu = jnp.mean(y, axis=-1, keepdims=True)
        var = jnp.mean((y - mu) ** 2, axis=-1, keepdims=True)
        inv = jax.lax.rsqrt(var + eps)
        o_ref[...] = ((y - mu) * inv * g_ref[...] + bt_ref[...]).astype(o_ref.dtype)


def matmul_residual_layernorm(x, w, b, res, gamma, beta, eps=1e-12,
                              tm=TM_DEFAULT, tk=TK_DEFAULT):
    M, K = x.shape
    N = w.shape[1]                      # hidden size; LN axis (not tiled)
    if M < 8 or N < 128 or K < 128:
        return _mm_res_ln_ref(x, w, b, res, gamma, beta, eps)
    tm = _fit(M, tm, 16)
    tk = _fit(K, tk, 128)
    grid = (M // tm, K // tk)
    return pl.pallas_call(
        functools.partial(_matmul_res_ln_kernel, eps=eps),
        out_shape=jax.ShapeDtypeStruct((M, N), jnp.bfloat16),
        grid=grid,
        in_specs=[
            pl.BlockSpec((tm, tk), lambda i, k: (i, k)),
            pl.BlockSpec((tk, N), lambda i, k: (k, 0)),
            pl.BlockSpec((1, N), lambda i, k: (0, 0)),
            pl.BlockSpec((tm, N), lambda i, k: (i, 0)),
            pl.BlockSpec((1, N), lambda i, k: (0, 0)),
            pl.BlockSpec((1, N), lambda i, k: (0, 0)),
        ],
        out_specs=pl.BlockSpec((tm, N), lambda i, k: (i, 0)),
        scratch_shapes=[pltpu.VMEM((tm, N), jnp.float32)],
        compiler_params=pltpu.CompilerParams(
            dimension_semantics=("parallel", "arbitrary"),
            vmem_limit_bytes=VMEM_LIMIT),
    )(x.astype(jnp.bfloat16), w.astype(jnp.bfloat16),
      b.reshape(1, N).astype(jnp.float32), res.astype(jnp.bfloat16),
      gamma.reshape(1, N).astype(jnp.float32),
      beta.reshape(1, N).astype(jnp.float32))


def _ln_kernel(x_ref, g_ref, b_ref, o_ref, *, eps):
    """Row-tiled LayerNorm over the last (hidden) axis; fp32 statistics."""
    x = x_ref[...].astype(jnp.float32)
    mu = jnp.mean(x, axis=-1, keepdims=True)
    var = jnp.mean((x - mu) ** 2, axis=-1, keepdims=True)
    inv = jax.lax.rsqrt(var + eps)
    o_ref[...] = ((x - mu) * inv * g_ref[...] + b_ref[...]).astype(o_ref.dtype)


def layernorm(x, gamma, beta, eps=1e-12, tm=512):
    M, H = x.shape
    if M < 8 or H < 128:
        return _ln_ref(x, gamma, beta, eps)
    tm = _fit(M, tm, 16)
    grid = (M // tm,)
    return pl.pallas_call(
        functools.partial(_ln_kernel, eps=eps),
        out_shape=jax.ShapeDtypeStruct((M, H), jnp.bfloat16),
        grid=grid,
        in_specs=[
            pl.BlockSpec((tm, H), lambda i: (i, 0)),
            pl.BlockSpec((1, H), lambda i: (0, 0)),
            pl.BlockSpec((1, H), lambda i: (0, 0)),
        ],
        out_specs=pl.BlockSpec((tm, H), lambda i: (i, 0)),
        compiler_params=pltpu.CompilerParams(
            dimension_semantics=("parallel",),
            vmem_limit_bytes=VMEM_LIMIT),
    )(x, gamma.reshape(1, H).astype(jnp.float32),
      beta.reshape(1, H).astype(jnp.float32))


def _attn_kernel(q_ref, k_ref, v_ref, bias_ref, o_ref, *,
                 num_heads, head_dim, scale):
    """Multi-head self-attention for one (batch, query-tile) grid step.

    Q/K/V arrive as lane-dense (rows, H) slices of the fused [S, 3H]
    projection (BlockSpec handles the column offsets 0/H/2H), so no
    JAX-level head transposes ever round-trip HBM.  The score tile is
    (Tq, S); softmax statistics are fp32; all heads are concatenated into
    a single lane-dense output store.
    """
    bias = bias_ref[...].astype(jnp.float32)                 # (1, S)
    # Fold the softmax scale into q: Tq*H multiplies instead of Tq*S per head.
    q = (q_ref[...].astype(jnp.float32) * scale).astype(jnp.bfloat16)

    outs = []
    for h in range(num_heads):
        sl = slice(h * head_dim, (h + 1) * head_dim)
        s = jax.lax.dot_general(
            q[:, sl], k_ref[:, sl], (((1,), (1,)), ((), ())),
            preferred_element_type=jnp.float32)               # (Tq, S)
        s = s + bias
        s = s - jnp.max(s, axis=-1, keepdims=True)
        p = jnp.exp(s)
        l = jnp.sum(p, axis=-1, keepdims=True)
        o = jnp.dot(p.astype(v_ref.dtype), v_ref[:, sl],
                    preferred_element_type=jnp.float32)       # (Tq, Dh)
        outs.append(o * pl.reciprocal(l, approx=True))
    # Single lane-dense store of all heads (avoids per-head masked vst).
    o_ref[...] = jnp.concatenate(outs, axis=-1).astype(o_ref.dtype)
    # TODO(synk): for very long sequences switch to online-softmax K tiling so
    # the full-S key/value blocks need not be VMEM-resident per step.


def attention(qkv, mask_bias, *, num_heads, head_dim, tq=256):
    B, S, _ = qkv.shape
    H = num_heads * head_dim
    if H % 128 != 0 or S % 8 != 0 or S < 8:
        return _attention_ref(qkv, mask_bias, num_heads, head_dim)
    tq = _fit(S, tq, 16)
    grid = (B, S // tq)
    scale = 1.0 / math.sqrt(head_dim)
    qkv = qkv.astype(jnp.bfloat16)
    return pl.pallas_call(
        functools.partial(_attn_kernel, num_heads=num_heads,
                          head_dim=head_dim, scale=scale),
        out_shape=jax.ShapeDtypeStruct((B, S, H), jnp.bfloat16),
        grid=grid,
        in_specs=[
            # Q / K / V are column slices [0:H], [H:2H], [2H:3H] of the fused
            # projection, selected purely via the block index on the last axis.
            pl.BlockSpec((pl.Squeezed(), tq, H), lambda b, qi: (b, qi, 0)),
            pl.BlockSpec((pl.Squeezed(), S, H), lambda b, qi: (b, 0, 1)),
            pl.BlockSpec((pl.Squeezed(), S, H), lambda b, qi: (b, 0, 2)),
            pl.BlockSpec((pl.Squeezed(), 1, S), lambda b, qi: (b, 0, 0)),
        ],
        out_specs=pl.BlockSpec((pl.Squeezed(), tq, H), lambda b, qi: (b, qi, 0)),
        compiler_params=pltpu.CompilerParams(
            dimension_semantics=("parallel", "parallel"),
            vmem_limit_bytes=VMEM_LIMIT),
    )(qkv, qkv, qkv, mask_bias.astype(jnp.float32))


# ---------------------------------------------------------------------------
# Synthetic BERT parameters + forward
# ---------------------------------------------------------------------------

CFG = dict(vocab=1000, max_pos=128, type_vocab=2, hidden=128, heads=4,
           layers=2, intermediate=512, num_labels=2)


def _init(key, shape, dtype=jnp.bfloat16):
    return (0.02 * jax.random.normal(key, shape)).astype(dtype)


def init_params(key, cfg=CFG):
    H, I = cfg["hidden"], cfg["intermediate"]
    keys = iter(jax.random.split(key, 256))
    p = {
        # Embedding tables stay f32 (jnp gather path); LN params f32.
        "word_emb": _init(next(keys), (cfg["vocab"], H), jnp.float32),
        "pos_emb": _init(next(keys), (cfg["max_pos"], H), jnp.float32),
        "type_emb": _init(next(keys), (cfg["type_vocab"], H), jnp.float32),
        "emb_ln_g": jnp.ones((H,), jnp.float32),
        "emb_ln_b": jnp.zeros((H,), jnp.float32),
        # Tiny head stays in plain-jnp f32.
        "pooler_w": _init(next(keys), (H, H), jnp.float32),
        "pooler_b": jnp.zeros((H,), jnp.float32),
        "cls_w": _init(next(keys), (H, cfg["num_labels"]), jnp.float32),
        "cls_b": jnp.zeros((cfg["num_labels"],), jnp.float32),
        "layers": [],
    }
    for _ in range(cfg["layers"]):
        layer = {
            # Fused QKV projection weight: columns [0:H]=Q, [H:2H]=K, [2H:3H]=V.
            "w_qkv": _init(next(keys), (H, 3 * H)),
            "b_qkv": jnp.zeros((3 * H,), jnp.float32),
            "wo": _init(next(keys), (H, H)), "bo": jnp.zeros((H,), jnp.float32),
            "ln1_g": jnp.ones((H,), jnp.float32),
            "ln1_b": jnp.zeros((H,), jnp.float32),
            "wi": _init(next(keys), (H, I)), "bi": jnp.zeros((I,), jnp.float32),
            "wf": _init(next(keys), (I, H)), "bf": jnp.zeros((H,), jnp.float32),
            "ln2_g": jnp.ones((H,), jnp.float32),
            "ln2_b": jnp.zeros((H,), jnp.float32),
        }
        p["layers"].append(layer)
    return p


def bert_forward(params, input_ids, attention_mask, token_type_ids, cfg=CFG):
    B, S = input_ids.shape
    H, Hn = cfg["hidden"], cfg["heads"]
    Dh = H // Hn
    M = B * S

    # Embeddings (gather glue in plain JAX, f32 sum), then Pallas LayerNorm
    # which emits the bf16 residual stream.
    emb = (jnp.take(params["word_emb"], input_ids, axis=0)
           + params["pos_emb"][None, :S, :]
           + jnp.take(params["type_emb"], token_type_ids, axis=0))
    x = layernorm(emb.reshape(M, H).astype(jnp.float32),
                  params["emb_ln_g"], params["emb_ln_b"])        # bf16 [M,H]

    # Additive attention-mask bias, HF-style (kept fp32 so -1e9 is safe).
    mask_bias = ((1.0 - attention_mask.astype(jnp.float32))
                 * -1e9)[:, None, :]                              # (B, 1, S)

    for layer in params["layers"]:
        # Fused QKV projection: one bf16 matmul instead of three.
        qkv = linear(x, layer["w_qkv"], layer["b_qkv"])           # bf16 [M,3H]
        ctx = attention(qkv.reshape(B, S, 3 * H), mask_bias,
                        num_heads=Hn, head_dim=Dh)                # bf16 [B,S,H]
        ctx = ctx.reshape(M, H)                                   # free reshape
        # Fused output projection + residual + LayerNorm (one HBM write).
        x = matmul_residual_layernorm(ctx, layer["wo"], layer["bo"], x,
                                      layer["ln1_g"], layer["ln1_b"])
        inter = linear(x, layer["wi"], layer["bi"], activation="gelu")
        # Fused FFN down-projection + residual + LayerNorm.
        x = matmul_residual_layernorm(inter, layer["wf"], layer["bf"], x,
                                      layer["ln2_g"], layer["ln2_b"])

    seq = x.reshape(B, S, H)
    cls = seq[:, 0, :].astype(jnp.float32)                        # [CLS] feats
    # Tiny pooler / classifier: plain jnp (far below one vreg of work).
    pooled = jnp.tanh(cls @ params["pooler_w"] + params["pooler_b"])
    logits = pooled @ params["cls_w"] + params["cls_b"]
    return logits, cls


class BertPallas:
    """Mirrors the PyTorch `Bert` wrapper semantics (eval mode)."""

    def __init__(self, params, option="normal", chunk=False,
                 ret_features=False, num_labels=2):
        self.params = params
        self.option = option
        self.chunk = chunk
        self.ret_features = ret_features
        self.num_labels = num_labels
        # TODO(synk): longformer global_attention_mask branch not implemented
        # (bert_name is always a plain BERT here).

    def _forward(self, inp):
        inp = dict(inp)
        overflow = inp.pop("overflow_to_sample_mapping")
        logits, cls_features = bert_forward(
            self.params, inp["input_ids"], inp["attention_mask"],
            inp["token_type_ids"])
        output = cls_features if self.ret_features else logits
        if self.chunk:
            mapping = np.asarray(overflow)
            real_num = len(set(mapping.tolist()))
            sums = jax.ops.segment_sum(output, jnp.asarray(mapping),
                                       num_segments=real_num)
            counts = jax.ops.segment_sum(
                jnp.ones((output.shape[0], 1), jnp.float32),
                jnp.asarray(mapping), num_segments=real_num)
            output = sums / counts
        return output

    def forward(self, input):
        if self.option == "normal":
            return self._forward(input[0])
        elif self.option == "triplet":
            return tuple(self._forward(s) for s in input[:-1])


# ---------------------------------------------------------------------------
# Demo
# ---------------------------------------------------------------------------

if __name__ == "__main__":
    key = jax.random.PRNGKey(0)
    pkey, dkey = jax.random.split(key)

    params = init_params(pkey)

    # Small but lane-aligned shapes so the Pallas path (not the sub-vreg jnp
    # fallback) is exercised: B=2, S=128, hidden=128, 4 heads, 2 layers.
    B, S = 2, 128
    input_ids = jax.random.randint(dkey, (B, S), 0, CFG["vocab"], dtype=jnp.int32)
    attention_mask = jnp.ones((B, S), dtype=jnp.int32)
    token_type_ids = jnp.zeros((B, S), dtype=jnp.int32)
    overflow_to_sample_mapping = jnp.arange(B, dtype=jnp.int32)

    bert_input = ({
        "input_ids": input_ids,
        "attention_mask": attention_mask,
        "token_type_ids": token_type_ids,
        "overflow_to_sample_mapping": overflow_to_sample_mapping,
    },)

    model = BertPallas(params, option="normal", chunk=False,
                       ret_features=False, num_labels=CFG["num_labels"])
    logits = model.forward(bert_input)
    jax.block_until_ready(logits)
    assert logits.shape == (B, CFG["num_labels"])
    assert bool(jnp.all(jnp.isfinite(logits)))
    print("KERNEL_OK")
</pallas_src>

<mosaic_0001>
module attributes {stable_mosaic.version = 11 : i64} {
  func.func @_ln_kernel(%arg0: i32, %arg1: memref<256x128xf32, #tpu.memory_space<vmem>>, %arg2: memref<1x128xf32, #tpu.memory_space<vmem>>, %arg3: memref<1x128xf32, #tpu.memory_space<vmem>>, %arg4: memref<256x128xbf16, #tpu.memory_space<vmem>>) attributes {dimension_semantics = [#tpu.dimension_semantics<parallel>], iteration_bounds = array<i64: 1>, scalar_prefetch = 0 : i64, scratch_operands = 0 : i64, tpu.core_type = #tpu.core_type<tc>, window_params = [{transform_indices = @transform_0, window_bounds = array<i64: 256, 128>}, {pipeline_mode = #tpu.pipeline_mode<synchronous>, transform_indices = @transform_1, window_bounds = array<i64: 1, 128>}, {pipeline_mode = #tpu.pipeline_mode<synchronous>, transform_indices = @transform_2, window_bounds = array<i64: 1, 128>}, {transform_indices = @transform_3, window_bounds = array<i64: 256, 128>}]} {
    %c0 = arith.constant 0 : index
    %c0_0 = arith.constant 0 : index
    %0 = vector.load %arg1[%c0, %c0_0] : memref<256x128xf32, #tpu.memory_space<vmem>>, vector<256x128xf32>
    %cst = arith.constant dense<0.000000e+00> : vector<256xf32>
    %1 = vector.multi_reduction <add>, %0, %cst [1] : vector<256x128xf32> to vector<256xf32>
    %2 = vector.shape_cast %1 : vector<256xf32> to vector<256x1xf32>
    %cst_1 = arith.constant 1.280000e+02 : f32
    %3 = vector.broadcast %cst_1 : f32 to vector<256x1xf32>
    %4 = arith.divf %2, %3 : vector<256x1xf32>
    %5 = vector.broadcast %4 : vector<256x1xf32> to vector<256x128xf32>
    %6 = arith.subf %0, %5 : vector<256x128xf32>
    %7 = arith.mulf %6, %6 : vector<256x128xf32>
    %cst_2 = arith.constant dense<0.000000e+00> : vector<256xf32>
    %8 = vector.multi_reduction <add>, %7, %cst_2 [1] : vector<256x128xf32> to vector<256xf32>
    %9 = vector.shape_cast %8 : vector<256xf32> to vector<256x1xf32>
    %cst_3 = arith.constant 1.280000e+02 : f32
    %10 = vector.broadcast %cst_3 : f32 to vector<256x1xf32>
    %11 = arith.divf %9, %10 : vector<256x1xf32>
    %cst_4 = arith.constant 9.99999996E-13 : f32
    %12 = vector.broadcast %cst_4 : f32 to vector<256x1xf32>
    %13 = arith.addf %11, %12 : vector<256x1xf32>
    %14 = math.rsqrt %13 : vector<256x1xf32>
    %15 = vector.broadcast %4 : vector<256x1xf32> to vector<256x128xf32>
    %16 = arith.subf %0, %15 : vector<256x128xf32>
    %17 = vector.broadcast %14 : vector<256x1xf32> to vector<256x128xf32>
    %18 = arith.mulf %16, %17 : vector<256x128xf32>
    %c0_5 = arith.constant 0 : index
    %c0_6 = arith.constant 0 : index
    %19 = vector.load %arg2[%c0_5, %c0_6] : memref<1x128xf32, #tpu.memory_space<vmem>>, vector<1x128xf32>
    %20 = vector.broadcast %19 : vector<1x128xf32> to vector<256x128xf32>
    %21 = arith.mulf %18, %20 : vector<256x128xf32>
    %c0_7 = arith.constant 0 : index
    %c0_8 = arith.constant 0 : index
    %22 = vector.load %arg3[%c0_7, %c0_8] : memref<1x128xf32, #tpu.memory_space<vmem>>, vector<1x128xf32>
    %23 = vector.broadcast %22 : vector<1x128xf32> to vector<256x128xf32>
    %24 = arith.addf %21, %23 : vector<256x128xf32>
    %25 = arith.truncf %24 : vector<256x128xf32> to vector<256x128xbf16>
    %c0_9 = arith.constant 0 : index
    %c0_10 = arith.constant 0 : index
    %26 = vector.load %arg4[%c0_9, %c0_10] : memref<256x128xbf16, #tpu.memory_space<vmem>>, vector<256x128xbf16>
    tpu.vector_store %arg4[%c0_9, %c0_10], %25 {strides = array<i32>} : memref<256x128xbf16, #tpu.memory_space<vmem>>, vector<256x128xbf16>,
    return
  }
  func.func @transform_0(%arg0: i32) -> (i32, i32) {
    %c0_i32 = arith.constant 0 : i32
    %c0_i32_0 = arith.constant 0 : i32
    return %arg0, %c0_i32 : i32, i32
  }
  func.func @transform_1(%arg0: i32) -> (i32, i32) {
    %c0_i32 = arith.constant 0 : i32
    %c0_i32_0 = arith.constant 0 : i32
    %c0_i32_1 = arith.constant 0 : i32
    return %c0_i32, %c0_i32_0 : i32, i32
  }
  func.func @transform_2(%arg0: i32) -> (i32, i32) {
    %c0_i32 = arith.constant 0 : i32
    %c0_i32_0 = arith.constant 0 : i32
    %c0_i32_1 = arith.constant 0 : i32
    return %c0_i32, %c0_i32_0 : i32, i32
  }
  func.func @transform_3(%arg0: i32) -> (i32, i32) {
    %c0_i32 = arith.constant 0 : i32
    %c0_i32_0 = arith.constant 0 : i32
    return %arg0, %c0_i32 : i32, i32
  }
}

</mosaic_0001>

<bundles_post_ra>
// kernel: tpu_custom_call.1
= control target key start
LH: loop header
LB: loop body
LE: loop exit
PB: predicated region body
PF: predicated region fallthrough
CT: control target
= control target key end

     0   :  { %8 = vsyncpa [#allocation3], 0  ;;  %s2014_s0 = inlined_call_operand.hbm [shape: f32[256,128], index: 0, kind: input, shape index: {}]   ;;  %s2015_s1 = inlined_call_operand.hbm [shape: f32[1,128], index: 1, kind: input, shape index: {}]   ;;  %s2016_s2 = inlined_call_operand.vmem [shape: f32[1,128], index: 2, kind: input, shape index: {}]   ;;  %s2017_s3 = inlined_call_operand.hbm [shape: bf16[256,128], index: 3, kind: output, shape index: {}]  }
   0x1   :  { %9 = vsyncpa [#allocation6], 0 }
   0x2   :  { %10 = vsyncpa [#allocation4], 0  ;;  %s15_s14 = sshll.u32 %s2014_s0, 4  ;;  %s1129_s15 = smov [#allocation2]   ;;  %s16_s14 = int_to_ptr.hbm [resolvable:$true] %s15_s14 }
   0x3   :  { %s17_s16 = sshll.u32 %s1129_s15, 4  ;;  %s29_s19 = sshll.u32 %s2015_s1, 4  ;;  %s18_s16 = int_to_ptr.vmem [resolvable:$true] %s17_s16  ;;  %s30_s19 = int_to_ptr.hbm [resolvable:$true] %s29_s19 }
   0x4   :  { %s1130_s20 = smov 128   ;;  %s1131_s21 = smov 8  }
   0x5   :  { %23 = dma.hbm_to_vmem [thread:$0]  %s16_s14, 4096, %s18_s16, [#allocation3], %s1130_s20, %s1130_s20, %s1131_s21  }
   0x6   :  { %s1132_s22 = smov [#allocation5]  }
   0x7   :  { %s31_s23 = sshll.u32 %s1132_s22, 4  ;;  %s32_s23 = int_to_ptr.vmem [resolvable:$true] %s31_s23 }
   0x8   :  { %34 = dma.hbm_to_vmem [thread:$0]  %s30_s19, 16, %s32_s23, [#allocation6]  }
   0x9   :  { %1123 = dma.done.wait [#allocation3], 4096  }
   0xa   :  { %1124 = vsyncadd [#allocation3], 4294963200 }
   0xb   :  { %1125 = dma.done.wait [#allocation6], 16  }
   0xc   :  { %1126 = vsyncadd [#allocation6], 4294967280  ;;  %v1163_v0 = vld [vmem:[#allocation2 + $0x20] sm:$0xff]  ;;  %v1165_v1 = vld [vmem:[#allocation2 + $0x10] sm:$0xff]  ;;  %v1133_v32 = vmov 128.0   ;;  %s866_s27 = sshll.u32 %s2017_s3, 4  ;;  %s867_s27 = int_to_ptr.hbm [resolvable:$true] %s866_s27 }
   0xd   :  { %v1167_v2 = vld [vmem:[#allocation2] sm:$0xff]  ;;  %85 = vadd.xlane.f32.xlu2 %v1163_v0  ;;  %81 = vadd.xlane.f32.xlu1 %v1165_v1  ;;  %v1172_v3 = vld [vmem:[#allocation2 + $0x28] sm:$0xff]  ;;  %v1174_v4 = vld [vmem:[#allocation2 + $0x18] sm:$0xff]  ;;  %985 = vrcp.f32 %v1133_v32  ;;  %s1135_s28 = smov 64   ;;  %s1136_s29 = smov 4  }
   0xe   :  { %77 = vadd.xlane.f32.xlu0 %v1167_v2  ;;  %v1176_v5 = vld [vmem:[#allocation2 + $0x8] sm:$0xff]  ;;  %v1181_v6 = vld [vmem:[#allocation2 + $0x40] sm:$0xff]  ;;  %v1183_v7 = vld [vmem:[#allocation2 + $0x38] sm:$0xff] }
   0xf   :  { %v1185_v8 = vld [vmem:[#allocation2 + $0x30] sm:$0xff]  ;;  %v1190_v9 = vld [vmem:[#allocation2 + $0x58] sm:$0xff]  ;;  %v1194_v11 = vld [vmem:[#allocation2 + $0x48] sm:$0xff] }
  0x10   :  { %v1192_v10 = vld [vmem:[#allocation2 + $0x50] sm:$0xff]  ;;  %v1201_v13 = vld [vmem:[#allocation2 + $0x68] sm:$0xff]  ;;  %v1203_v14 = vld [vmem:[#allocation2 + $0x60] sm:$0xff] }
  0x11   :  { %v1199_v12 = vld [vmem:[#allocation2 + $0x70] sm:$0xff]  ;;  %v1208_v15 = vld [vmem:[#allocation2 + $0x88] sm:$0xff]  ;;  %v1210_v16 = vld [vmem:[#allocation2 + $0x80] sm:$0xff] }
  0x12   :  { %v1212_v17 = vld [vmem:[#allocation2 + $0x78] sm:$0xff]  ;;  %v1217_v18 = vld [vmem:[#allocation2 + $0xa0] sm:$0xff]  ;;  %v1221_v20 = vld [vmem:[#allocation2 + $0x90] sm:$0xff] }
  0x13   :  { %v1219_v19 = vld [vmem:[#allocation2 + $0x98] sm:$0xff]  ;;  %v1228_v22 = vld [vmem:[#allocation2 + $0xb0] sm:$0xff]  ;;  %v1230_v23 = vld [vmem:[#allocation2 + $0xa8] sm:$0xff]  ;;  %v986_v33 = vpop.eup %985 }
  0x14   :  { %v1226_v21 = vld [vmem:[#allocation2 + $0xb8] sm:$0xff]  ;;  %v1235_v24 = vld [vmem:[#allocation2 + $0xd0] sm:$0xff]  ;;  %v1237_v25 = vld [vmem:[#allocation2 + $0xc8] sm:$0xff]  ;;  %v142_v34 = vmul.f32 128.0, %v986_v33  ;;  %vm146_vm0 = vweird.f32 %v986_v33 }
  0x15   :  { %87 = vadd.xlane.f32.xlu2 %v1172_v3  ;;  %83 = vadd.xlane.f32.xlu1 %v1174_v4  ;;  %v1239_v26 = vld [vmem:[#allocation2 + $0xc0] sm:$0xff]  ;;  %v1244_v27 = vld [vmem:[#allocation2 + $0xe8] sm:$0xff]  ;;  %v1248_v29 = vld [vmem:[#allocation2 + $0xd8] sm:$0xff] }
  0x16   :  { %79 = vadd.xlane.f32.xlu0 %v1176_v5  ;;  %v1246_v28 = vld [vmem:[#allocation2 + $0xe0] sm:$0xff]  ;;  %v1253_v30 = vld [vmem:[#allocation2 + $0xf8] sm:$0xff]  ;;  %v1255_v31 = vld [vmem:[#allocation2 + $0xf0] sm:$0xff]  ;;  %v143_v35 = vsub.f32 1.0, %v142_v34 }
  0x18   :  { %v144_v36 = vmul.f32 %v986_v33, %v143_v35 }
  0x1a   :  { %v145_v37 = vadd.f32 %v986_v33, %v144_v36 }
  0x1c   :  { %v1259_v38 = vsel %vm146_vm0, %v986_v33, %v145_v37 }
  0x1d   :  { %93 = vadd.xlane.f32.xlu2 %v1181_v6  ;;  %91 = vadd.xlane.f32.xlu1 %v1183_v7 }
  0x1e   :  { %89 = vadd.xlane.f32.xlu0 %v1185_v8 }
  0x25   :  { %99 = vadd.xlane.f32.xlu2 %v1190_v9  ;;  %97 = vadd.xlane.f32.xlu1 %v1192_v10 }
  0x26   :  { %95 = vadd.xlane.f32.xlu0 %v1194_v11 }
  0x2d   :  { %105 = vadd.xlane.f32.xlu2 %v1199_v12  ;;  %103 = vadd.xlane.f32.xlu1 %v1201_v13 }
  0x2e   :  { %101 = vadd.xlane.f32.xlu0 %v1203_v14 }
  0x35   :  { %111 = vadd.xlane.f32.xlu2 %v1208_v15  ;;  %109 = vadd.xlane.f32.xlu1 %v1210_v16 }
  0x36   :  { %107 = vadd.xlane.f32.xlu0 %v1212_v17 }
  0x3d   :  { %117 = vadd.xlane.f32.xlu2 %v1217_v18  ;;  %115 = vadd.xlane.f32.xlu1 %v1219_v19 }
  0x3e   :  { %113 = vadd.xlane.f32.xlu0 %v1221_v20 }
  0x45   :  { %123 = vadd.xlane.f32.xlu2 %v1226_v21  ;;  %121 = vadd.xlane.f32.xlu1 %v1228_v22 }
  0x46   :  { %119 = vadd.xlane.f32.xlu0 %v1230_v23 }
  0x4d   :  { %129 = vadd.xlane.f32.xlu2 %v1235_v24  ;;  %127 = vadd.xlane.f32.xlu1 %v1237_v25 }
  0x4e   :  { %125 = vadd.xlane.f32.xlu0 %v1239_v26 }
  0x55   :  { %135 = vadd.xlane.f32.xlu2 %v1244_v27  ;;  %133 = vadd.xlane.f32.xlu1 %v1246_v28 }
  0x56   :  { %131 = vadd.xlane.f32.xlu0 %v1248_v29 }
  0x5d   :  { %139 = vadd.xlane.f32.xlu1 %v1253_v30 }
  0x5e   :  { %137 = vadd.xlane.f32.xlu0 %v1255_v31 }
  0x80   :  { %v86_v39 = vpop.xlane.xlu2 %85  ;;  %v82_v40 = vpop.xlane.xlu1 %81 }
  0x81   :  { %v150_v41 = vmul.f32 %v1259_v38, %v82_v40  ;;  %v78_v42 = vpop.xlane.xlu0 %77  ;;  %v152_v56 = vmul.f32 %v1259_v38, %v86_v39 }
  0x82   :  { %v148_v43 = vmul.f32 %v1259_v38, %v78_v42 }
  0x83   :  { %v1264_v44 = vsub.f32 %v1165_v1, %v150_v41  ;;  %v1293_v61 = vsub.f32 %v1163_v0, %v152_v56 }
  0x84   :  { %v1267_v45 = vsub.f32 %v1167_v2, %v148_v43 }
  0x85   :  { %v214_v46 = vmul.f32 %v1264_v44, %v1264_v44  ;;  %v216_v32 = vmul.f32 %v1293_v61, %v1293_v61 }
  0x86   :  { %v212_v47 = vmul.f32 %v1267_v45, %v1267_v45 }
  0x87   :  { %248 = vadd.xlane.f32.xlu1 %v214_v46 }
  0x88   :  { %244 = vadd.xlane.f32.xlu2 %v212_v47  ;;  %v88_v48 = vpop.xlane.xlu2 %87  ;;  %v84_v49 = vpop.xlane.xlu1 %83 }
  0x89   :  { %v153_v50 = vmul.f32 %v1259_v38, %v88_v48  ;;  %v151_v51 = vmul.f32 %v1259_v38, %v84_v49  ;;  %v80_v52 = vpop.xlane.xlu0 %79 }
  0x8a   :  { %v149_v53 = vmul.f32 %v1259_v38, %v80_v52 }
  0x8b   :  { %v1277_v54 = vsub.f32 %v1172_v3, %v153_v50  ;;  %v1280_v55 = vsub.f32 %v1174_v4, %v151_v51 }
  0x8c   :  { %v1284_v57 = vsub.f32 %v1176_v5, %v149_v53 }
  0x8d   :  { %v217_v58 = vmul.f32 %v1277_v54, %v1277_v54  ;;  %v215_v59 = vmul.f32 %v1280_v55, %v1280_v55 }
  0x8e   :  { %v213_v60 = vmul.f32 %v1284_v57, %v1284_v57 }
  0x8f   :  { %254 = vadd.xlane.f32.xlu1 %v217_v58 }
  0x90   :  { %250 = vadd.xlane.f32.xlu2 %v215_v59  ;;  %246 = vadd.xlane.f32.xlu0 %v213_v60  ;;  %v94_v62 = vpop.xlane.xlu2 %93  ;;  %v92_v63 = vpop.xlane.xlu1 %91 }
  0x91   :  { %v156_v1 = vmul.f32 %v1259_v38, %v94_v62  ;;  %v90_v2 = vpop.xlane.xlu0 %89  ;;  %v155_v0 = vmul.f32 %v1259_v38, %v92_v63 }
  0x92   :  { %v154_v3 = vmul.f32 %v1259_v38, %v90_v2 }
  0x93   :  { %v1298_v4 = vsub.f32 %v1181_v6, %v156_v1  ;;  %v1311_v6 = vsub.f32 %v1183_v7, %v155_v0 }
  0x94   :  { %v1301_v5 = vsub.f32 %v1185_v8, %v154_v3 }
  0x95   :  { %v220_v33 = vmul.f32 %v1298_v4, %v1298_v4  ;;  %v219_v42 = vmul.f32 %v1311_v6, %v1311_v6 }
  0x96   :  { %v218_v34 = vmul.f32 %v1301_v5, %v1301_v5 }
  0x97   :  { %260 = vadd.xlane.f32.xlu1 %v220_v33 }
  0x98   :  { %252 = vadd.xlane.f32.xlu0 %v216_v32  ;;  %256 = vadd.xlane.f32.xlu2 %v218_v34  ;;  %v100_v35 = vpop.xlane.xlu2 %99  ;;  %v98_v8 = vpop.xlane.xlu1 %97 }
  0x99   :  { %v159_v36 = vmul.f32 %v1259_v38, %v100_v35  ;;  %v96_v37 = vpop.xlane.xlu0 %95  ;;  %v158_v43 = vmul.f32 %v1259_v38, %v98_v8 }
  0x9a   :  { %v157_v39 = vmul.f32 %v1259_v38, %v96_v37 }
  0x9b   :  { %v1316_v40 = vsub.f32 %v1190_v9, %v159_v36  ;;  %v1329_v9 = vsub.f32 %v1192_v10, %v158_v43 }
  0x9c   :  { %v1319_v41 = vsub.f32 %v1194_v11, %v157_v39 }
  0x9d   :  { %v223_v7 = vmul.f32 %v1316_v40, %v1316_v40  ;;  %v222_v53 = vmul.f32 %v1329_v9, %v1329_v9 }
  0x9e   :  { %v221_v46 = vmul.f32 %v1319_v41, %v1319_v41 }
  0x9f   :  { %266 = vadd.xlane.f32.xlu1 %v223_v7 }
  0xa0   :  { %258 = vadd.xlane.f32.xlu0 %v219_v42  ;;  %262 = vadd.xlane.f32.xlu2 %v221_v46  ;;  %v106_v47 = vpop.xlane.xlu2 %105  ;;  %v104_v11 = vpop.xlane.xlu1 %103 }
  0xa1   :  { %v162_v48 = vmul.f32 %v1259_v38, %v106_v47  ;;  %v102_v49 = vpop.xlane.xlu0 %101  ;;  %v161_v56 = vmul.f32 %v1259_v38, %v104_v11 }
  0xa2   :  { %v160_v50 = vmul.f32 %v1259_v38, %v102_v49 }
  0xa3   :  { %v1334_v51 = vsub.f32 %v1199_v12, %v162_v48  ;;  %v1347_v12 = vsub.f32 %v1201_v13, %v161_v56 }
  0xa4   :  { %v1337_v52 = vsub.f32 %v1203_v14, %v160_v50 }
  0xa5   :  { %v226_v10 = vmul.f32 %v1334_v51, %v1334_v51  ;;  %v225_v3 = vmul.f32 %v1347_v12, %v1347_v12 }
  0xa6   :  { %v224_v58 = vmul.f32 %v1337_v52, %v1337_v52 }
  0xa7   :  { %272 = vadd.xlane.f32.xlu1 %v226_v10 }
  0xa8   :  { %264 = vadd.xlane.f32.xlu0 %v222_v53  ;;  %268 = vadd.xlane.f32.xlu2 %v224_v58  ;;  %v112_v59 = vpop.xlane.xlu2 %111  ;;  %v110_v14 = vpop.xlane.xlu1 %109 }
  0xa9   :  { %v165_v60 = vmul.f32 %v1259_v38, %v112_v59  ;;  %v108_v62 = vpop.xlane.xlu0 %107  ;;  %v164_v32 = vmul.f32 %v1259_v38, %v110_v14 }
  0xaa   :  { %v163_v63 = vmul.f32 %v1259_v38, %v108_v62 }
  0xab   :  { %v1352_v1 = vsub.f32 %v1208_v15, %v165_v60  ;;  %v1365_v15 = vsub.f32 %v1210_v16, %v164_v32 }
  0xac   :  { %v1355_v2 = vsub.f32 %v1212_v17, %v163_v63 }
  0xad   :  { %v229_v13 = vmul.f32 %v1352_v1, %v1352_v1  ;;  %v228_v39 = vmul.f32 %v1365_v15, %v1365_v15 }
  0xae   :  { %v227_v0 = vmul.f32 %v1355_v2, %v1355_v2 }
  0xaf   :  { %278 = vadd.xlane.f32.xlu1 %v229_v13 }
  0xb0   :  { %270 = vadd.xlane.f32.xlu0 %v225_v3  ;;  %274 = vadd.xlane.f32.xlu2 %v227_v0  ;;  %v118_v33 = vpop.xlane.xlu2 %117  ;;  %v116_v17 = vpop.xlane.xlu1 %115 }
  0xb1   :  { %v168_v34 = vmul.f32 %v1259_v38, %v118_v33  ;;  %v114_v35 = vpop.xlane.xlu0 %113  ;;  %v167_v42 = vmul.f32 %v1259_v38, %v116_v17 }
  0xb2   :  { %v166_v8 = vmul.f32 %v1259_v38, %v114_v35 }
  0xb3   :  { %v1370_v36 = vsub.f32 %v1217_v18, %v168_v34  ;;  %v1383_v18 = vsub.f32 %v1219_v19, %v167_v42 }
  0xb4   :  { %v1373_v37 = vsub.f32 %v1221_v20, %v166_v8 }
  0xb5   :  { %v232_v16 = vmul.f32 %v1370_v36, %v1370_v36  ;;  %v231_v50 = vmul.f32 %v1383_v18, %v1383_v18 }
  0xb6   :  { %v230_v43 = vmul.f32 %v1373_v37, %v1373_v37 }
  0xb7   :  { %284 = vadd.xlane.f32.xlu1 %v232_v16 }
  0xb8   :  { %276 = vadd.xlane.f32.xlu0 %v228_v39  ;;  %280 = vadd.xlane.f32.xlu2 %v230_v43  ;;  %v124_v7 = vpop.xlane.xlu2 %123  ;;  %v122_v20 = vpop.xlane.xlu1 %121 }
  0xb9   :  { %v171_v46 = vmul.f32 %v1259_v38, %v124_v7  ;;  %v120_v47 = vpop.xlane.xlu0 %119  ;;  %v170_v53 = vmul.f32 %v1259_v38, %v122_v20 }
  0xba   :  { %v169_v11 = vmul.f32 %v1259_v38, %v120_v47 }
  0xbb   :  { %v1388_v48 = vsub.f32 %v1226_v21, %v171_v46  ;;  %v1401_v21 = vsub.f32 %v1228_v22, %v170_v53 }
  0xbc   :  { %v1391_v49 = vsub.f32 %v1230_v23, %v169_v11 }
  0xbd   :  { %v235_v19 = vmul.f32 %v1388_v48, %v1388_v48  ;;  %v234_v63 = vmul.f32 %v1401_v21, %v1401_v21 }
  0xbe   :  { %v233_v56 = vmul.f32 %v1391_v49, %v1391_v49 }
  0xbf   :  { %290 = vadd.xlane.f32.xlu1 %v235_v19 }
  0xc0   :  { %282 = vadd.xlane.f32.xlu0 %v231_v50  ;;  %286 = vadd.xlane.f32.xlu2 %v233_v56  ;;  %v130_v10 = vpop.xlane.xlu2 %129  ;;  %v128_v23 = vpop.xlane.xlu1 %127 }
  0xc1   :  { %v174_v58 = vmul.f32 %v1259_v38, %v130_v10  ;;  %v126_v59 = vpop.xlane.xlu0 %125  ;;  %v173_v3 = vmul.f32 %v1259_v38, %v128_v23 }
  0xc2   :  { %v172_v14 = vmul.f32 %v1259_v38, %v126_v59 }
  0xc3   :  { %v1406_v60 = vsub.f32 %v1235_v24, %v174_v58  ;;  %v1419_v24 = vsub.f32 %v1237_v25, %v173_v3 }
  0xc4   :  { %v1409_v62 = vsub.f32 %v1239_v26, %v172_v14 }
  0xc5   :  { %v238_v22 = vmul.f32 %v1406_v60, %v1406_v60  ;;  %v237_v8 = vmul.f32 %v1419_v24, %v1419_v24 }
  0xc6   :  { %v236_v32 = vmul.f32 %v1409_v62, %v1409_v62 }
  0xc7   :  { %296 = vadd.xlane.f32.xlu1 %v238_v22 }
  0xc8   :  { %288 = vadd.xlane.f32.xlu0 %v234_v63  ;;  %292 = vadd.xlane.f32.xlu2 %v236_v32  ;;  %v136_v13 = vpop.xlane.xlu2 %135  ;;  %v134_v26 = vpop.xlane.xlu1 %133 }
  0xc9   :  { %v177_v0 = vmul.f32 %v1259_v38, %v136_v13  ;;  %v132_v33 = vpop.xlane.xlu0 %131  ;;  %v176_v39 = vmul.f32 %v1259_v38, %v134_v26 }
  0xca   :  { %v175_v17 = vmul.f32 %v1259_v38, %v132_v33 }
  0xcb   :  { %v1424_v34 = vsub.f32 %v1244_v27, %v177_v0  ;;  %v1437_v27 = vsub.f32 %v1246_v28, %v176_v39 }
  0xcc   :  { %v1427_v35 = vsub.f32 %v1248_v29, %v175_v17 }
  0xcd   :  { %v241_v25 = vmul.f32 %v1424_v34, %v1424_v34  ;;  %v240_v20 = vmul.f32 %v1437_v27, %v1437_v27 }
  0xce   :  { %v239_v42 = vmul.f32 %v1427_v35, %v1427_v35 }
  0xcf   :  { %302 = vadd.xlane.f32.xlu1 %v241_v25 }
  0xd0   :  { %294 = vadd.xlane.f32.xlu0 %v237_v8  ;;  %298 = vadd.xlane.f32.xlu2 %v239_v42  ;;  %v140_v29 = vpop.xlane.xlu1 %139 }
  0xd1   :  { %v138_v16 = vpop.xlane.xlu0 %137  ;;  %v179_v46 = vmul.f32 %v1259_v38, %v140_v29 }
  0xd2   :  { %v178_v43 = vmul.f32 %v1259_v38, %v138_v16 }
  0xd3   :  { %v1449_v28 = vsub.f32 %v1253_v30, %v179_v46 }
  0xd4   :  { %v1441_v7 = vsub.f32 %v1255_v31, %v178_v43 }
  0xd5   :  { %v243_v11 = vmul.f32 %v1449_v28, %v1449_v28 }
  0xd6   :  { %v242_v47 = vmul.f32 %v1441_v7, %v1441_v7 }
  0xd8   :  { %300 = vadd.xlane.f32.xlu0 %v240_v20  ;;  %304 = vadd.xlane.f32.xlu2 %v242_v47 }
  0xe0   :  { %306 = vadd.xlane.f32.xlu0 %v243_v11 }
  0xfa   :  { %v249_v50 = vpop.xlane.xlu1 %248 }
  0xfb   :  { %v310_v31 = vmul.f32 %v249_v50, %v1259_v38  ;;  %v245_v53 = vpop.xlane.xlu2 %244 }
  0xfc   :  { %v308_v19 = vmul.f32 %v245_v53, %v1259_v38 }
  0xfd   :  { %v342_v56 = vadd.f32 1e-12, %v310_v31 }
  0xfe   :  { %v340_v10 = vadd.f32 1e-12, %v308_v19 }
  0xff   :  { %987 = vrsqrt.f32 %v342_v56  ;;  %vm398_vm1 = vweird.f32 %v342_v56 }
 0x100   :  { %989 = vrsqrt.f32 %v340_v10  ;;  %vm378_vm4 = vweird.f32 %v340_v10 }
 0x102   :  { %v255_v23 = vpop.xlane.xlu1 %254 }
 0x103   :  { %v313_v58 = vmul.f32 %v255_v23, %v1259_v38  ;;  %v251_v59 = vpop.xlane.xlu2 %250  ;;  %v247_v30 = vpop.xlane.xlu0 %246 }
 0x104   :  { %v311_v14 = vmul.f32 %v251_v59, %v1259_v38  ;;  %v309_v63 = vmul.f32 %v247_v30, %v1259_v38 }
 0x105   :  { %v988_v3 = vpop.eup %987  ;;  %v1458_v22 = vadd.f32 1e-12, %v313_v58 }
 0x106   :  { %v990_v32 = vpop.eup %989  ;;  %v393_v13 = vmul.f32 %v988_v3, %v342_v56  ;;  %v1460_v26 = vadd.f32 1e-12, %v311_v14  ;;  %v1462_v0 = vadd.f32 1e-12, %v309_v63  ;;  %vm399_vm2 = vweird.f32 %v988_v3 }
 0x107   :  { %v373_v33 = vmul.f32 %v990_v32, %v340_v10  ;;  %991 = vrsqrt.f32 %v1458_v22  ;;  %vm379_vm3 = vweird.f32 %v990_v32  ;;  %vm1479_vm5 = vmor %vm398_vm1, %vm399_vm2  ;;  %vm428_vm7 = vweird.f32 %v1458_v22 }
 0x108   :  { %v394_v17 = vmul.f32 %v988_v3, %v393_v13  ;;  %993 = vrsqrt.f32 %v1460_v26  ;;  %vm380_vm6 = vmor %vm378_vm4, %vm379_vm3  ;;  %vm408_vm9 = vweird.f32 %v1460_v26  ;;  %vm388_vm11 = vweird.f32 %v1462_v0 }
 0x109   :  { %v374_v8 = vmul.f32 %v990_v32, %v373_v33  ;;  %995 = vrsqrt.f32 %v1462_v0 }
 0x10a   :  { %v395_v39 = vmul.f32 0.5, %v394_v17  ;;  %v261_v25 = vpop.xlane.xlu1 %260 }
 0x10b   :  { %v375_v42 = vmul.f32 0.5, %v374_v8  ;;  %v316_v16 = vmul.f32 %v261_v25, %v1259_v38  ;;  %v257_v29 = vpop.xlane.xlu2 %256  ;;  %v253_v46 = vpop.xlane.xlu0 %252 }
 0x10c   :  { %v396_v43 = vsub.f32 1.5, %v395_v39  ;;  %v314_v20 = vmul.f32 %v257_v29, %v1259_v38  ;;  %v312_v14 = vmul.f32 %v253_v46, %v1259_v38 }
 0x10d   :  { %v1469_v47 = vpop.eup %991  ;;  %v376_v11 = vsub.f32 1.5, %v375_v42  ;;  %v1471_v50 = vadd.f32 1e-12, %v316_v16  ;;  %v1494_v42 = vld [vmem:[#allocation5] ss:$0 sm:$0xff] }
 0x10e   :  { %v994_v31 = vpop.eup %993  ;;  %v397_v53 = vmul.f32 %v988_v3, %v396_v43  ;;  %v423_v19 = vmul.f32 %v1469_v47, %v1458_v22  ;;  %v1475_v23 = vadd.f32 1e-12, %v314_v20  ;;  %vm429_vm8 = vweird.f32 %v1469_v47 }
 0x10f   :  { %v1477_v58 = vpop.eup %995  ;;  %v377_v59 = vmul.f32 %v990_v32, %v376_v11  ;;  %v403_v30 = vmul.f32 %v994_v31, %v1460_v26  ;;  %997 = vrsqrt.f32 %v1471_v50  ;;  %v1498_v29 = vadd.f32 1e-12, %v312_v14  ;;  %vm1520_vm13 = vmor %vm428_vm7, %vm429_vm8 }
 0x110   :  { %v401_v10 = vsel %vm1479_vm5, %v988_v3, %v397_v53  ;;  %v424_v63 = vmul.f32 %v1469_v47, %v423_v19  ;;  %v383_v13 = vmul.f32 %v1477_v58, %v1462_v0  ;;  %999 = vrsqrt.f32 %v1475_v23 }
 0x111   :  { %v381_v33 = vsel %vm380_vm6, %v990_v32, %v377_v59  ;;  %v404_v17 = vmul.f32 %v994_v31, %v403_v30  ;;  %v694_v3 = vmul.f32 %v401_v10, %v1264_v44  ;;  %vm409_vm10 = vweird.f32 %v994_v31  ;;  %v1513_v59 = vld [vmem:[%s2016_s2] ss:$0 sm:$0xff]  ;;  %s1134_s2 = smov [#allocation7]  }
 0x112   :  { %v425_v8 = vmul.f32 0.5, %v424_v63  ;;  %v384_v39 = vmul.f32 %v1477_v58, %v383_v13  ;;  %v267_v25 = vpop.xlane.xlu1 %266  ;;  %v692_v32 = vmul.f32 %v381_v33, %v1267_v45  ;;  %1001 = vrsqrt.f32 %v1498_v29  ;;  %vm410_vm15 = vmor %vm408_vm9, %vm409_vm10  ;;  %s864_s24 = sshll.u32 %s1134_s2, 4  ;;  %s865_s24 = int_to_ptr.vmem [resolvable:$true] %s864_s24 }
 0x113   :  { %v405_v16 = vmul.f32 0.5, %v404_v17  ;;  %v319_v46 = vmul.f32 %v267_v25, %v1259_v38  ;;  %v263_v11 = vpop.xlane.xlu2 %262  ;;  %vm389_vm12 = vweird.f32 %v1477_v58  ;;  %v259_v56 = vpop.xlane.xlu0 %258  ;;  %v730_v30 = vmul.f32 %v1494_v42, %v694_v3 }
 0x114   :  { %v426_v43 = vsub.f32 1.5, %v425_v8  ;;  %v385_v20 = vmul.f32 0.5, %v384_v39  ;;  %vm458_vm14 = vweird.f32 %v1471_v50  ;;  %v728_v33 = vmul.f32 %v1494_v42, %v692_v32  ;;  %vm390_vm1 = vmor %vm388_vm11, %vm389_vm12 }
 0x115   :  { %v1502_v53 = vpop.eup %997  ;;  %v406_v19 = vsub.f32 1.5, %v405_v16  ;;  %v1525_v63 = vadd.f32 1e-12, %v319_v46  ;;  %vm438_vm0 = vweird.f32 %v1475_v23  ;;  %v317_v3 = vmul.f32 %v263_v11, %v1259_v38 }
 0x116   :  { %v386_v44 = vsub.f32 1.5, %v385_v20  ;;  %v453_v45 = vmul.f32 %v1502_v53, %v1471_v50  ;;  %v1527_v13 = vpop.eup %999  ;;  %v427_v17 = vmul.f32 %v1469_v47, %v426_v43  ;;  %v315_v26 = vmul.f32 %v259_v56, %v1259_v38 }
 0x117   :  { %v407_v10 = vmul.f32 %v994_v31, %v406_v19  ;;  %v433_v25 = vmul.f32 %v1527_v13, %v1475_v23  ;;  %1003 = vrsqrt.f32 %v1525_v63  ;;  %v766_v46 = vadd.f32 %v1513_v59, %v730_v30 }
 0x118   :  { %v387_v22 = vmul.f32 %v1477_v58, %v386_v44  ;;  %v454_v8 = vmul.f32 %v1502_v53, %v453_v45  ;;  %v1002_v20 = vpop.eup %1001  ;;  %vm459_vm2 = vweird.f32 %v1502_v53  ;;  %v431_v11 = vsel %vm1520_vm13, %v1469_v47, %v427_v17 }
 0x119   :  { %v411_v39 = vsel %vm410_vm15, %v994_v31, %v407_v10  ;;  %v434_v19 = vmul.f32 %v1527_v13, %v433_v25  ;;  %v413_v44 = vmul.f32 %v1002_v20, %v1498_v29  ;;  %v764_v45 = vadd.f32 %v1513_v59, %v728_v33  ;;  %vm1571_vm3 = vmor %vm458_vm14, %vm459_vm2 }
 0x11a   :  { %v695_v16 = vmul.f32 %v411_v39, %v1280_v55  ;;  %v391_v32 = vsel %vm390_vm1, %v1477_v58, %v387_v22  ;;  %v455_v43 = vmul.f32 0.5, %v454_v8  ;;  %v273_v31 = vpop.xlane.xlu1 %272  ;;  %v1559_v10 = vadd.f32 1e-12, %v317_v3 }
 0x11b   :  { %v693_v0 = vmul.f32 %v391_v32, %v1284_v57  ;;  %v435_v30 = vmul.f32 0.5, %v434_v19  ;;  %v414_v8 = vmul.f32 %v1002_v20, %v413_v44  ;;  %v1563_v39 = vadd.f32 1e-12, %v315_v26  ;;  %v269_v47 = vpop.xlane.xlu2 %268 }
 0x11c   :  { %v731_v55 = vmul.f32 %v1494_v42, %v695_v16  ;;  %v456_v58 = vsub.f32 1.5, %v455_v43  ;;  %v697_v14 = vmul.f32 %v431_v11, %v1277_v54  ;;  %1005 = vrsqrt.f32 %v1559_v10  ;;  %v265_v54 = vpop.xlane.xlu0 %264 }
 0x11d   :  { %v729_v56 = vmul.f32 %v1494_v42, %v693_v0  ;;  %v436_v25 = vsub.f32 1.5, %v435_v30  ;;  %v1576_v3 = vpop.eup %1003  ;;  %vm439_vm4 = vweird.f32 %v1527_v13  ;;  %v415_v16 = vmul.f32 0.5, %v414_v8 }
 0x11e   :  { %v767_v57 = vadd.f32 %v1513_v59, %v731_v55  ;;  %v457_v22 = vmul.f32 %v1502_v53, %v456_v58  ;;  %1007 = vrsqrt.f32 %v1563_v39  ;;  %v483_v50 = vmul.f32 %v1576_v3, %v1525_v63  ;;  %vm1590_vm6 = vmor %vm438_vm0, %vm439_vm4 }
 0x11f   :  { %v765_v17 = vadd.f32 %v1513_v59, %v729_v56  ;;  %v437_v43 = vmul.f32 %v1527_v13, %v436_v25  ;;  %v416_v19 = vsub.f32 1.5, %v415_v16  ;;  %vm419_vm5 = vweird.f32 %v1002_v20 }
 0x120   :  { %v888_v26 = vpack.c.bf16 %v767_v57, %v766_v46  ;;  %v461_v0 = vsel %vm1571_vm3, %v1502_v53, %v457_v22  ;;  %v322_v46 = vmul.f32 %v273_v31, %v1259_v38  ;;  %v733_v11 = vmul.f32 %v1494_v42, %v697_v14 }
 0x121   :  { %v883_v32 = vpack.c.bf16 %v765_v17, %v764_v45  ;;  %v484_v58 = vmul.f32 %v1576_v3, %v483_v50  ;;  %v320_v44 = vmul.f32 %v269_v47, %v1259_v38  ;;  %v441_v53 = vsel %vm1590_vm6, %v1527_v13, %v437_v43 }
 0x122   :  { %960 = vst [vmem:[#allocation7 + $0x8] sm:$0xff] %v888_v26   ;;  %v279_v45 = vpop.xlane.xlu1 %278  ;;  %v417_v56 = vmul.f32 %v1002_v20, %v416_v19  ;;  %vm418_vm7 = vweird.f32 %v1498_v29  ;;  %v1600_v31 = vadd.f32 1e-12, %v322_v46  ;;  %v1006_v30 = vpop.eup %1005  ;;  %v700_v23 = vmul.f32 %v461_v0, %v1298_v4 }
 0x123   :  { %884 = vst [vmem:[#allocation7] sm:$0xff] %v883_v32   ;;  %vm420_vm8 = vmor %vm418_vm7, %vm419_vm5  ;;  %vm488_vm9 = vweird.f32 %v1525_v63  ;;  %v1604_v57 = vadd.f32 1e-12, %v320_v44  ;;  %v318_v22 = vmul.f32 %v265_v54, %v1259_v38  ;;  %v485_v14 = vmul.f32 0.5, %v484_v58 }
 0x124   :  { %v1008_v8 = vpop.eup %1007  ;;  %v421_v47 = vsel %vm420_vm8, %v1002_v20, %v417_v56  ;;  %v463_v13 = vmul.f32 %v1006_v30, %v1559_v10  ;;  %v325_v17 = vmul.f32 %v279_v45, %v1259_v38  ;;  %v769_v29 = vadd.f32 %v1513_v59, %v733_v11  ;;  %v275_v20 = vpop.xlane.xlu2 %274 }
 0x125   :  { %v698_v33 = vmul.f32 %v441_v53, %v1301_v5  ;;  %v696_v4 = vmul.f32 %v421_v47, %v1293_v61  ;;  %v443_v25 = vmul.f32 %v1008_v8, %v1563_v39  ;;  %vm489_vm10 = vweird.f32 %v1576_v3  ;;  %v271_v0 = vpop.xlane.xlu0 %270 }
 0x126   :  { %v464_v26 = vmul.f32 %v1006_v30, %v463_v13  ;;  %vm468_vm11 = vweird.f32 %v1559_v10  ;;  %1009 = vrsqrt.f32 %v1600_v31  ;;  %v736_v16 = vmul.f32 %v1494_v42, %v700_v23  ;;  %vm1636_vm15 = vmor %vm488_vm9, %vm489_vm10 }
 0x127   :  { %v732_v54 = vmul.f32 %v1494_v42, %v696_v4  ;;  %v444_v32 = vmul.f32 %v1008_v8, %v443_v25  ;;  %1011 = vrsqrt.f32 %v1604_v57  ;;  %v486_v5 = vsub.f32 1.5, %v485_v14 }
 0x128   :  { %v465_v43 = vmul.f32 0.5, %v464_v26  ;;  %v1619_v61 = vadd.f32 1e-12, %v318_v22  ;;  %v1621_v50 = vadd.f32 1e-12, %v325_v17  ;;  %v734_v19 = vmul.f32 %v1494_v42, %v698_v33 }
 0x129   :  { %v768_v46 = vadd.f32 %v1513_v59, %v732_v54  ;;  %v445_v11 = vmul.f32 0.5, %v444_v32  ;;  %v323_v55 = vmul.f32 %v275_v20, %v1259_v38  ;;  %vm469_vm12 = vweird.f32 %v1006_v30 }
 0x12a   :  { %v466_v58 = vsub.f32 1.5, %v465_v43  ;;  %vm448_vm13 = vweird.f32 %v1563_v39  ;;  %1013 = vrsqrt.f32 %v1619_v61  ;;  %vm449_vm14 = vweird.f32 %v1008_v8  ;;  %vm470_vm0 = vmor %vm468_vm11, %vm469_vm12  ;;  %v285_v26 = vpop.xlane.xlu1 %284 }
 0x12b   :  { %v893_v44 = vpack.c.bf16 %v769_v29, %v768_v46  ;;  %v446_v45 = vsub.f32 1.5, %v445_v11  ;;  %1015 = vrsqrt.f32 %v1621_v50  ;;  %v487_v56 = vmul.f32 %v1576_v3, %v486_v5  ;;  %vm450_vm1 = vmor %vm448_vm13, %vm449_vm14 }
 0x12c   :  { %v1629_v53 = vpop.eup %1009  ;;  %v467_v22 = vmul.f32 %v1006_v30, %v466_v58  ;;  %v1640_v47 = vadd.f32 1e-12, %v323_v55  ;;  %v321_v14 = vmul.f32 %v271_v0, %v1259_v38  ;;  %v772_v17 = vadd.f32 %v1513_v59, %v736_v16  ;;  %v281_v11 = vpop.xlane.xlu2 %280 }
 0x12d   :  { %v1643_v13 = vpop.eup %1011  ;;  %v770_v29 = vadd.f32 %v1513_v59, %v734_v19  ;;  %961 = vst [vmem:[#allocation7 + $0x10] sm:$0xff] %v893_v44   ;;  %v447_v63 = vmul.f32 %v1008_v8, %v446_v45  ;;  %v513_v33 = vmul.f32 %v1629_v53, %v1600_v31  ;;  %vm518_vm2 = vweird.f32 %v1600_v31  ;;  %v1678_v55 = vpop.xlane.xlu0 %276 }
 0x12e   :  { %v471_v4 = vsel %vm470_vm0, %v1006_v30, %v467_v22  ;;  %v493_v25 = vmul.f32 %v1643_v13, %v1604_v57  ;;  %vm498_vm3 = vweird.f32 %v1604_v57  ;;  %1017 = vrsqrt.f32 %v1640_v47 }
 0x12f   :  { %v701_v10 = vmul.f32 %v471_v4, %v1319_v41  ;;  %v451_v20 = vsel %vm450_vm1, %v1008_v8, %v447_v63  ;;  %v514_v16 = vmul.f32 %v1629_v53, %v513_v33  ;;  %v491_v39 = vsel %vm1636_vm15, %v1576_v3, %v487_v56 }
 0x130   :  { %v1014_v30 = vpop.eup %1013  ;;  %v699_v54 = vmul.f32 %v451_v20, %v1311_v6  ;;  %v494_v32 = vmul.f32 %v1643_v13, %v493_v25  ;;  %v1667_v5 = vadd.f32 1e-12, %v321_v14  ;;  %v328_v19 = vmul.f32 %v285_v26, %v1259_v38 }
 0x131   :  { %v1669_v43 = vpop.eup %1015  ;;  %v737_v41 = vmul.f32 %v1494_v42, %v701_v10  ;;  %v515_v8 = vmul.f32 0.5, %v514_v16  ;;  %v473_v0 = vmul.f32 %v1014_v30, %v1619_v61  ;;  %vm519_vm4 = vweird.f32 %v1629_v53 }
 0x132   :  { %v735_v46 = vmul.f32 %v1494_v42, %v699_v54  ;;  %v495_v3 = vmul.f32 0.5, %v494_v32  ;;  %v543_v6 = vmul.f32 %v1669_v43, %v1621_v50  ;;  %1019 = vrsqrt.f32 %v1667_v5  ;;  %vm1690_vm5 = vmor %vm518_vm2, %vm519_vm4 }
 0x133   :  { %v773_v58 = vadd.f32 %v1513_v59, %v737_v41  ;;  %v516_v44 = vsub.f32 1.5, %v515_v8  ;;  %v474_v45 = vmul.f32 %v1014_v30, %v473_v0  ;;  %v703_v56 = vmul.f32 %v491_v39, %v1316_v40 }
 0x134   :  { %v771_v23 = vadd.f32 %v1513_v59, %v735_v46  ;;  %v496_v22 = vsub.f32 1.5, %v495_v3  ;;  %v544_v14 = vmul.f32 %v1669_v43, %v543_v6  ;;  %v1018_v63 = vpop.eup %1017  ;;  %v1694_v10 = vadd.f32 1e-12, %v328_v19  ;;  %v291_v46 = vpop.xlane.xlu1 %290 }
 0x135   :  { %v903_v33 = vpack.c.bf16 %v773_v58, %v772_v17  ;;  %v517_v4 = vmul.f32 %v1629_v53, %v516_v44  ;;  %v475_v26 = vmul.f32 0.5, %v474_v45  ;;  %vm499_vm6 = vweird.f32 %v1643_v13  ;;  %v287_v45 = vpop.xlane.xlu2 %286 }
 0x136   :  { %v898_v40 = vpack.c.bf16 %v771_v23, %v770_v29  ;;  %v545_v20 = vmul.f32 0.5, %v544_v14  ;;  %v523_v16 = vmul.f32 %v1018_v63, %v1640_v47  ;;  %v497_v17 = vmul.f32 %v1643_v13, %v496_v22  ;;  %vm1709_vm9 = vmor %vm498_vm3, %vm499_vm6 }
 0x137   :  { %963 = vst [vmem:[#allocation7 + $0x20] sm:$0xff] %v903_v33   ;;  %v476_v39 = vsub.f32 1.5, %v475_v26  ;;  %vm479_vm7 = vweird.f32 %v1014_v30  ;;  %1021 = vrsqrt.f32 %v1694_v10  ;;  %v521_v31 = vsel %vm1690_vm5, %v1629_v53, %v517_v4 }
 0x138   :  { %962 = vst [vmem:[#allocation7 + $0x18] sm:$0xff] %v898_v40   ;;  %vm478_vm8 = vweird.f32 %v1619_v61  ;;  %v524_v29 = vmul.f32 %v1018_v63, %v523_v16  ;;  %v1704_v54 = vpop.eup %1019  ;;  %v739_v32 = vmul.f32 %v1494_v42, %v703_v56  ;;  %v546_v0 = vsub.f32 1.5, %v545_v20  ;;  %v283_v56 = vpop.xlane.xlu0 %282 }
 0x139   :  { %v477_v8 = vmul.f32 %v1014_v30, %v476_v39  ;;  %v326_v19 = vmul.f32 %v281_v11, %v1259_v38  ;;  %vm480_vm10 = vmor %vm478_vm8, %vm479_vm7  ;;  %vm548_vm11 = vweird.f32 %v1621_v50  ;;  %vm549_vm12 = vweird.f32 %v1669_v43 }
 0x13a   :  { %v525_v61 = vmul.f32 0.5, %v524_v29  ;;  %v503_v53 = vmul.f32 %v1704_v54, %v1667_v5  ;;  %v706_v57 = vmul.f32 %v521_v31, %v1334_v51  ;;  %v501_v3 = vsel %vm1709_vm9, %v1643_v13, %v497_v17  ;;  %vm1738_vm15 = vmor %vm548_vm11, %vm549_vm12 }
 0x13b   :  { %v481_v6 = vsel %vm480_vm10, %v1014_v30, %v477_v8  ;;  %v1722_v58 = vadd.f32 1e-12, %v326_v19  ;;  %vm528_vm13 = vweird.f32 %v1640_v47  ;;  %vm529_vm14 = vweird.f32 %v1018_v63 }
 0x13c   :  { %v702_v11 = vmul.f32 %v481_v6, %v1329_v9  ;;  %v526_v44 = vsub.f32 1.5, %v525_v61  ;;  %v775_v22 = vadd.f32 %v1513_v59, %v739_v32  ;;  %v547_v51 = vmul.f32 %v1669_v43, %v546_v0  ;;  %vm530_vm0 = vmor %vm528_vm13, %vm529_vm14  ;;  %v297_v61 = vpop.xlane.xlu1 %296 }
 0x13d   :  { %v1726_v23 = vpop.eup %1021  ;;  %v504_v14 = vmul.f32 %v1704_v54, %v503_v53  ;;  %1023 = vrsqrt.f32 %v1722_v58  ;;  %v704_v13 = vmul.f32 %v501_v3, %v1337_v52  ;;  %v742_v25 = vmul.f32 %v1494_v42, %v706_v57 }
 0x13e   :  { %v738_v9 = vmul.f32 %v1494_v42, %v702_v11  ;;  %v527_v33 = vmul.f32 %v1018_v63, %v526_v44  ;;  %v573_v4 = vmul.f32 %v1726_v23, %v1694_v10  ;;  %vm509_vm1 = vweird.f32 %v1704_v54 }
 0x13f   :  { %v505_v52 = vmul.f32 0.5, %v504_v14  ;;  %v324_v26 = vmul.f32 %v1678_v55, %v1259_v38  ;;  %v331_v16 = vmul.f32 %v291_v46, %v1259_v38  ;;  %v551_v17 = vsel %vm1738_vm15, %v1669_v43, %v547_v51 }
 0x140   :  { %v774_v50 = vadd.f32 %v1513_v59, %v738_v9  ;;  %v531_v40 = vsel %vm530_vm0, %v1018_v63, %v527_v33  ;;  %v574_v20 = vmul.f32 %v1726_v23, %v573_v4  ;;  %v329_v55 = vmul.f32 %v287_v45, %v1259_v38  ;;  %v293_v45 = vpop.xlane.xlu2 %292 }
 0x141   :  { %v707_v47 = vmul.f32 %v531_v40, %v1355_v2  ;;  %v506_v39 = vsub.f32 1.5, %v505_v52  ;;  %v1757_v31 = vadd.f32 1e-12, %v324_v26  ;;  %v1759_v41 = vadd.f32 1e-12, %v331_v16 }
 0x142   :  { %v908_v29 = vpack.c.bf16 %v775_v22, %v774_v50  ;;  %v575_v32 = vmul.f32 0.5, %v574_v20  ;;  %vm508_vm2 = vweird.f32 %v1667_v5  ;;  %v778_v2 = vadd.f32 %v1513_v59, %v742_v25  ;;  %v289_v22 = vpop.xlane.xlu0 %288 }
 0x143   :  { %v1762_v63 = vpop.eup %1023  ;;  %v743_v8 = vmul.f32 %v1494_v42, %v707_v47  ;;  %v507_v0 = vmul.f32 %v1704_v54, %v506_v39  ;;  %1025 = vrsqrt.f32 %v1757_v31  ;;  %v740_v43 = vmul.f32 %v1494_v42, %v704_v13  ;;  %vm510_vm3 = vmor %vm508_vm2, %vm509_vm1 }
 0x144   :  { %964 = vst [vmem:[#allocation7 + $0x28] sm:$0xff] %v908_v29   ;;  %v553_v19 = vmul.f32 %v1762_v63, %v1722_v58  ;;  %1027 = vrsqrt.f32 %v1759_v41  ;;  %v709_v53 = vmul.f32 %v551_v17, %v1352_v1  ;;  %v1778_v57 = vadd.f32 1e-12, %v329_v55 }
 0x145   :  { %v779_v5 = vadd.f32 %v1513_v59, %v743_v8  ;;  %v511_v46 = vsel %vm510_vm3, %v1704_v54, %v507_v0  ;;  %v576_v6 = vsub.f32 1.5, %v575_v32  ;;  %v327_v44 = vmul.f32 %v283_v56, %v1259_v38  ;;  %v303_v0 = vpop.xlane.xlu1 %302 }
 0x146   :  { %v705_v3 = vmul.f32 %v511_v46, %v1347_v12  ;;  %v554_v11 = vmul.f32 %v1762_v63, %v553_v19  ;;  %vm578_vm4 = vweird.f32 %v1694_v10  ;;  %1029 = vrsqrt.f32 %v1778_v57 }
 0x147   :  { %v918_v51 = vpack.c.bf16 %v779_v5, %v778_v2  ;;  %v334_v1 = vmul.f32 %v297_v61, %v1259_v38  ;;  %vm579_vm5 = vweird.f32 %v1726_v23  ;;  %v1788_v12 = vadd.f32 1e-12, %v327_v44 }
 0x148   :  { %v741_v54 = vmul.f32 %v1494_v42, %v705_v3  ;;  %v555_v14 = vmul.f32 0.5, %v554_v11  ;;  %v776_v9 = vadd.f32 %v1513_v59, %v740_v43  ;;  %v745_v56 = vmul.f32 %v1494_v42, %v709_v53  ;;  %vm1801_vm6 = vmor %vm578_vm4, %vm579_vm5  ;;  %v299_v5 = vpop.xlane.xlu2 %298 }
 0x149   :  { %v1026_v13 = vpop.eup %1025  ;;  %966 = vst [vmem:[#allocation7 + $0x38] sm:$0xff] %v918_v51   ;;  %v1792_v30 = vadd.f32 1e-12, %v334_v1  ;;  %v577_v25 = vmul.f32 %v1726_v23, %v576_v6  ;;  %1031 = vrsqrt.f32 %v1788_v12  ;;  %v332_v20 = vmul.f32 %v293_v45, %v1259_v38 }
 0x14a   :  { %v1794_v33 = vpop.eup %1027  ;;  %v777_v4 = vadd.f32 %v1513_v59, %v741_v54  ;;  %v556_v52 = vsub.f32 1.5, %v555_v14  ;;  %v533_v26 = vmul.f32 %v1026_v13, %v1757_v31  ;;  %v330_v16 = vmul.f32 %v289_v22, %v1259_v38  ;;  %v1831_v46 = vpop.xlane.xlu0 %294 }
 0x14b   :  { %v603_v40 = vmul.f32 %v1794_v33, %v1759_v41  ;;  %vm558_vm7 = vweird.f32 %v1722_v58  ;;  %vm559_vm8 = vweird.f32 %v1762_v63  ;;  %1033 = vrsqrt.f32 %v1792_v30 }
 0x14c   :  { %v913_v17 = vpack.c.bf16 %v777_v4, %v776_v9  ;;  %v534_v47 = vmul.f32 %v1026_v13, %v533_v26  ;;  %v1810_v39 = vpop.eup %1029  ;;  %v581_v29 = vsel %vm1801_vm6, %v1726_v23, %v577_v25  ;;  %v557_v32 = vmul.f32 %v1762_v63, %v556_v52  ;;  %vm1838_vm11 = vmor %vm558_vm7, %vm559_vm8 }
 0x14d   :  { %v604_v10 = vmul.f32 %v1794_v33, %v603_v40  ;;  %v583_v8 = vmul.f32 %v1810_v39, %v1778_v57  ;;  %v1823_v2 = vadd.f32 %v1513_v59, %v745_v56  ;;  %v1825_v19 = vadd.f32 1e-12, %v332_v20 }
 0x14e   :  { %965 = vst [vmem:[#allocation7 + $0x30] sm:$0xff] %v913_v17   ;;  %v535_v55 = vmul.f32 0.5, %v534_v47  ;;  %v1827_v61 = vadd.f32 1e-12, %v330_v16  ;;  %vm538_vm9 = vweird.f32 %v1757_v31  ;;  %vm539_vm10 = vweird.f32 %v1026_v13 }
 0x14f   :  { %v605_v43 = vmul.f32 0.5, %v604_v10  ;;  %v584_v23 = vmul.f32 %v1810_v39, %v583_v8  ;;  %v1032_v3 = vpop.eup %1031  ;;  %v712_v6 = vmul.f32 %v581_v29, %v1370_v36  ;;  %vm588_vm12 = vweird.f32 %v1778_v57  ;;  %vm540_vm13 = vmor %vm538_vm9, %vm539_vm10 }
 0x150   :  { %v536_v53 = vsub.f32 1.5, %v535_v55  ;;  %1035 = vrsqrt.f32 %v1825_v19  ;;  %v337_v44 = vmul.f32 %v303_v0, %v1259_v38  ;;  %v561_v45 = vsel %vm1838_vm11, %v1762_v63, %v557_v32 }
 0x151   :  { %v585_v36 = vmul.f32 0.5, %v584_v23  ;;  %v563_v51 = vmul.f32 %v1032_v3, %v1788_v12  ;;  %v1849_v1 = vpop.eup %1033  ;;  %v606_v58 = vsub.f32 1.5, %v605_v43  ;;  %vm589_vm14 = vweird.f32 %v1810_v39 }
 0x152   :  { %v537_v22 = vmul.f32 %v1026_v13, %v536_v53  ;;  %1037 = vrsqrt.f32 %v1827_v61  ;;  %v335_v54 = vmul.f32 %v299_v5, %v1259_v38  ;;  %v633_v56 = vmul.f32 %v1849_v1, %v1792_v30  ;;  %vm590_vm1 = vmor %vm588_vm12, %vm589_vm14  ;;  %v301_v43 = vpop.xlane.xlu0 %300 }
 0x153   :  { %v586_v9 = vsub.f32 1.5, %v585_v36  ;;  %v564_v63 = vmul.f32 %v1032_v3, %v563_v51  ;;  %vm608_vm15 = vweird.f32 %v1759_v41  ;;  %vm609_vm0 = vweird.f32 %v1794_v33 }
 0x154   :  { %v541_v14 = vsel %vm540_vm13, %v1026_v13, %v537_v22  ;;  %v1862_v31 = vadd.f32 1e-12, %v337_v44  ;;  %v710_v25 = vmul.f32 %v561_v45, %v1373_v37  ;;  %v634_v13 = vmul.f32 %v1849_v1, %v633_v56  ;;  %vm1885_vm3 = vmor %vm608_vm15, %vm609_vm0  ;;  %v305_v22 = vpop.xlane.xlu2 %304 }
 0x155   :  { %v708_v4 = vmul.f32 %v541_v14, %v1365_v15  ;;  %v587_v52 = vmul.f32 %v1810_v39, %v586_v9  ;;  %v565_v26 = vmul.f32 0.5, %v564_v63  ;;  %v748_v40 = vmul.f32 %v1494_v42, %v712_v6 }
 0x156   :  { %v1867_v50 = vpop.eup %1035  ;;  %vm569_vm2 = vweird.f32 %v1032_v3  ;;  %1039 = vrsqrt.f32 %v1862_v31  ;;  %v607_v15 = vmul.f32 %v1794_v33, %v606_v58  ;;  %v1878_v17 = vadd.f32 1e-12, %v335_v54 }
 0x157   :  { %v744_v20 = vmul.f32 %v1494_v42, %v708_v4  ;;  %v591_v37 = vsel %vm590_vm1, %v1810_v39, %v587_v52  ;;  %v566_v16 = vsub.f32 1.5, %v565_v26  ;;  %v635_v32 = vmul.f32 0.5, %v634_v13 }
 0x158   :  { %v1038_v47 = vpop.eup %1037  ;;  %v713_v29 = vmul.f32 %v591_v37, %v1391_v49  ;;  %v613_v39 = vmul.f32 %v1867_v50, %v1825_v19  ;;  %v746_v55 = vmul.f32 %v1494_v42, %v710_v25  ;;  %vm568_vm4 = vweird.f32 %v1788_v12 }
 0x159   :  { %v780_v10 = vadd.f32 %v1513_v59, %v744_v20  ;;  %v567_v8 = vmul.f32 %v1032_v3, %v566_v16  ;;  %v593_v0 = vmul.f32 %v1038_v47, %v1827_v61  ;;  %v784_v41 = vadd.f32 %v1513_v59, %v748_v40  ;;  %vm570_vm5 = vmor %vm568_vm4, %vm569_vm2 }
 0x15a   :  { %v749_v23 = vmul.f32 %v1494_v42, %v713_v29  ;;  %v611_v49 = vsel %vm1885_vm3, %v1794_v33, %v607_v15  ;;  %1041 = vrsqrt.f32 %v1878_v17  ;;  %v614_v45 = vmul.f32 %v1867_v50, %v613_v39  ;;  %v307_v37 = vpop.xlane.xlu0 %306 }
 0x15b   :  { %v923_v53 = vpack.c.bf16 %v1823_v2, %v780_v10  ;;  %v571_v5 = vsel %vm570_vm5, %v1032_v3, %v567_v8  ;;  %v594_v6 = vmul.f32 %v1038_v47, %v593_v0  ;;  %v636_v2 = vsub.f32 1.5, %v635_v32 }
 0x15c   :  { %v1903_v12 = vpop.eup %1039  ;;  %v785_v11 = vadd.f32 %v1513_v59, %v749_v23  ;;  %v711_v44 = vmul.f32 %v571_v5, %v1383_v18  ;;  %v782_v36 = vadd.f32 %v1513_v59, %v746_v55  ;;  %vm638_vm6 = vweird.f32 %v1792_v30 }
 0x15d   :  { %967 = vst [vmem:[#allocation7 + $0x40] sm:$0xff] %v923_v53   ;;  %v595_v33 = vmul.f32 0.5, %v594_v6  ;;  %v663_v3 = vmul.f32 %v1903_v12, %v1862_v31  ;;  %v715_v51 = vmul.f32 %v611_v49, %v1388_v48  ;;  %vm639_vm7 = vweird.f32 %v1849_v1 }
 0x15e   :  { %v933_v58 = vpack.c.bf16 %v785_v11, %v784_v41  ;;  %v747_v54 = vmul.f32 %v1494_v42, %v711_v44  ;;  %vm599_vm8 = vweird.f32 %v1038_v47  ;;  %v333_v14 = vmul.f32 %v1831_v46, %v1259_v38  ;;  %vm1923_vm10 = vmor %vm638_vm6, %vm639_vm7 }
 0x15f   :  { %v596_v18 = vsub.f32 1.5, %v595_v33  ;;  %v338_v9 = vmul.f32 %v305_v22, %v1259_v38  ;;  %v637_v56 = vmul.f32 %v1849_v1, %v636_v2  ;;  %v615_v4 = vmul.f32 0.5, %v614_v45 }
 0x160   :  { %969 = vst [vmem:[#allocation7 + $0x50] sm:$0xff] %v933_v58   ;;  %v783_v63 = vadd.f32 %v1513_v59, %v747_v54  ;;  %vm598_vm9 = vweird.f32 %v1827_v61  ;;  %v1042_v48 = vpop.eup %1041  ;;  %v664_v46 = vmul.f32 %v1903_v12, %v663_v3  ;;  %v1928_v26 = vadd.f32 1e-12, %v333_v14 }
 0x161   :  { %v597_v52 = vmul.f32 %v1038_v47, %v596_v18  ;;  %v1930_v13 = vadd.f32 1e-12, %v338_v9  ;;  %vm600_vm11 = vmor %vm598_vm9, %vm599_vm8  ;;  %v643_v20 = vmul.f32 %v1042_v48, %v1878_v17  ;;  %v336_v61 = vmul.f32 %v301_v43, %v1259_v38 }
 0x162   :  { %v928_v40 = vpack.c.bf16 %v783_v63, %v782_v36  ;;  %v751_v30 = vmul.f32 %v1494_v42, %v715_v51  ;;  %v641_v16 = vsel %vm1923_vm10, %v1849_v1, %v637_v56  ;;  %1043 = vrsqrt.f32 %v1928_v26 }
 0x163   :  { %v601_v15 = vsel %vm600_vm11, %v1038_v47, %v597_v52  ;;  %v644_v57 = vmul.f32 %v1042_v48, %v643_v20  ;;  %v616_v29 = vsub.f32 1.5, %v615_v4  ;;  %v665_v32 = vmul.f32 0.5, %v664_v46 }
 0x164   :  { %968 = vst [vmem:[#allocation7 + $0x48] sm:$0xff] %v928_v40   ;;  %v714_v10 = vmul.f32 %v601_v15, %v1401_v21  ;;  %1045 = vrsqrt.f32 %v1930_v13  ;;  %v1943_v8 = vadd.f32 1e-12, %v336_v61  ;;  %v339_v47 = vmul.f32 %v307_v37, %v1259_v38 }
 0x165   :  { %v645_v55 = vmul.f32 0.5, %v644_v57  ;;  %v787_v0 = vadd.f32 %v1513_v59, %v751_v30  ;;  %v718_v1 = vmul.f32 %v641_v16, %v1406_v60  ;;  %vm648_vm12 = vweird.f32 %v1878_v17 }
 0x166   :  { %v750_v39 = vmul.f32 %v1494_v42, %v714_v10  ;;  %vm649_vm13 = vweird.f32 %v1042_v48  ;;  %1047 = vrsqrt.f32 %v1943_v8  ;;  %v617_v41 = vmul.f32 %v1867_v50, %v616_v29 }
 0x167   :  { %v646_v43 = vsub.f32 1.5, %v645_v55  ;;  %vm618_vm14 = vweird.f32 %v1825_v19  ;;  %vm619_vm15 = vweird.f32 %v1867_v50  ;;  %v1954_v53 = vadd.f32 1e-12, %v339_v47  ;;  %vm650_vm1 = vmor %vm648_vm12, %vm649_vm13 }
 0x168   :  { %v786_v21 = vadd.f32 %v1513_v59, %v750_v39  ;;  %v1044_v38 = vpop.eup %1043  ;;  %v666_v49 = vsub.f32 1.5, %v665_v32  ;;  %vm668_vm0 = vweird.f32 %v1862_v31  ;;  %v754_v19 = vmul.f32 %v1494_v42, %v718_v1  ;;  %vm1962_vm2 = vmor %vm618_vm14, %vm619_vm15 }
 0x169   :  { %v647_v60 = vmul.f32 %v1042_v48, %v646_v43  ;;  %v623_v6 = vmul.f32 %v1044_v38, %v1928_v26  ;;  %1049 = vrsqrt.f32 %v1954_v53  ;;  %vm669_vm3 = vweird.f32 %v1903_v12 }
 0x16a   :  { %v938_v23 = vpack.c.bf16 %v787_v0, %v786_v21  ;;  %v1046_v5 = vpop.eup %1045  ;;  %v621_v17 = vsel %vm1962_vm2, %v1867_v50, %v617_v41  ;;  %v667_v33 = vmul.f32 %v1903_v12, %v666_v49  ;;  %vm1975_vm4 = vmor %vm668_vm0, %vm669_vm3  ;;  %v790_v50 = vadd.f32 %v1513_v59, %v754_v19 }
 0x16b   :  { %v651_v44 = vsel %vm650_vm1, %v1042_v48, %v647_v60  ;;  %v673_v2 = vmul.f32 %v1046_v5, %v1930_v13  ;;  %v624_v22 = vmul.f32 %v1044_v38, %v623_v6  ;;  %vm678_vm5 = vweird.f32 %v1930_v13 }
 0x16c   :  { %970 = vst [vmem:[#allocation7 + $0x58] sm:$0xff] %v938_v23   ;;  %v719_v45 = vmul.f32 %v651_v44, %v1427_v35  ;;  %v1048_v36 = vpop.eup %1047  ;;  %v716_v35 = vmul.f32 %v621_v17, %v1409_v62  ;;  %vm629_vm6 = vweird.f32 %v1044_v38  ;;  %v671_v4 = vsel %vm1975_vm4, %v1903_v12, %v667_v33 }
 0x16d   :  { %v674_v3 = vmul.f32 %v1046_v5, %v673_v2  ;;  %v625_v54 = vmul.f32 0.5, %v624_v22  ;;  %v653_v18 = vmul.f32 %v1048_v36, %v1943_v8  ;;  %vm679_vm7 = vweird.f32 %v1046_v5 }
 0x16e   :  { %v755_v58 = vmul.f32 %v1494_v42, %v719_v45  ;;  %vm628_vm8 = vweird.f32 %v1928_v26  ;;  %v752_v40 = vmul.f32 %v1494_v42, %v716_v35  ;;  %v721_v30 = vmul.f32 %v671_v4, %v1424_v34  ;;  %vm680_vm10 = vmor %vm678_vm5, %vm679_vm7 }
 0x16f   :  { %v675_v14 = vmul.f32 0.5, %v674_v3  ;;  %v1050_v9 = vpop.eup %1049  ;;  %v626_v31 = vsub.f32 1.5, %v625_v54  ;;  %v654_v56 = vmul.f32 %v1048_v36, %v653_v18  ;;  %vm630_vm9 = vmor %vm628_vm8, %vm629_vm6  ;;  %vm659_vm11 = vweird.f32 %v1048_v36 }
 0x170   :  { %v791_v63 = vadd.f32 %v1513_v59, %v755_v58  ;;  %v683_v25 = vmul.f32 %v1050_v9, %v1954_v53  ;;  %vm658_vm12 = vweird.f32 %v1943_v8  ;;  %vm689_vm14 = vweird.f32 %v1050_v9 }
 0x171   :  { %v676_v48 = vsub.f32 1.5, %v675_v14  ;;  %v627_v46 = vmul.f32 %v1044_v38, %v626_v31  ;;  %v655_v62 = vmul.f32 0.5, %v654_v56  ;;  %vm660_vm13 = vmor %vm658_vm12, %vm659_vm11  ;;  %v788_v34 = vadd.f32 %v1513_v59, %v752_v40 }
 0x172   :  { %v948_v52 = vpack.c.bf16 %v791_v63, %v790_v50  ;;  %v684_v61 = vmul.f32 %v1050_v9, %v683_v25  ;;  %v757_v32 = vmul.f32 %v1494_v42, %v721_v30  ;;  %vm688_vm15 = vweird.f32 %v1954_v53 }
 0x173   :  { %v677_v20 = vmul.f32 %v1046_v5, %v676_v48  ;;  %v631_v15 = vsel %vm630_vm9, %v1044_v38, %v627_v46  ;;  %v656_v12 = vsub.f32 1.5, %v655_v62  ;;  %vm690_vm0 = vmor %vm688_vm15, %vm689_vm14 }
 0x174   :  { %972 = vst [vmem:[#allocation7 + $0x68] sm:$0xff] %v948_v52   ;;  %v717_v37 = vmul.f32 %v631_v15, %v1419_v24  ;;  %v685_v10 = vmul.f32 0.5, %v684_v61  ;;  %v793_v41 = vadd.f32 %v1513_v59, %v757_v32 }
 0x175   :  { %v681_v16 = vsel %vm680_vm10, %v1046_v5, %v677_v20  ;;  %v657_v26 = vmul.f32 %v1048_v36, %v656_v12 }
 0x176   :  { %v753_v57 = vmul.f32 %v1494_v42, %v717_v37  ;;  %v686_v29 = vsub.f32 1.5, %v685_v10  ;;  %v722_v13 = vmul.f32 %v681_v16, %v1441_v7 }
 0x177   :  { %v661_v39 = vsel %vm660_vm13, %v1048_v36, %v657_v26 }
 0x178   :  { %v789_v55 = vadd.f32 %v1513_v59, %v753_v57  ;;  %v720_v24 = vmul.f32 %v661_v39, %v1437_v27  ;;  %v687_v47 = vmul.f32 %v1050_v9, %v686_v29  ;;  %v758_v21 = vmul.f32 %v1494_v42, %v722_v13 }
 0x17a   :  { %v943_v8 = vpack.c.bf16 %v789_v55, %v788_v34  ;;  %v756_v0 = vmul.f32 %v1494_v42, %v720_v24  ;;  %v691_v1 = vsel %vm690_vm0, %v1050_v9, %v687_v47  ;;  %v794_v53 = vadd.f32 %v1513_v59, %v758_v21 }
 0x17b   :  { %v723_v43 = vmul.f32 %v691_v1, %v1449_v28 }
 0x17c   :  { %971 = vst [vmem:[#allocation7 + $0x60] sm:$0xff] %v943_v8   ;;  %v792_v7 = vadd.f32 %v1513_v59, %v756_v0 }
 0x17d   :  { %v759_v38 = vmul.f32 %v1494_v42, %v723_v43 }
 0x17e   :  { %v953_v27 = vpack.c.bf16 %v793_v41, %v792_v7 }
 0x17f   :  { %v795_v23 = vadd.f32 %v1513_v59, %v759_v38 }
 0x180   :  { %973 = vst [vmem:[#allocation7 + $0x70] sm:$0xff] %v953_v27  }
 0x181   :  { %v958_v28 = vpack.c.bf16 %v795_v23, %v794_v53 }
 0x183   :  { %974 = vst [vmem:[#allocation7 + $0x78] sm:$0xff] %v958_v28  }
 0x184   :  { %872 = dma.vmem_to_hbm [thread:$0]  %s865_s24, 2048, %s867_s27, [#allocation4], %s1135_s28, %s1135_s28, %s1136_s29  }
 0x185   :  { %1127 = dma.done.wait [#allocation4], 2048  }
 0x186   :  { %1128 = vsyncadd [#allocation4], 4294965248 }
 0x187   :  { %877 = vsyncpa [#allocation3], 1 }
 0x188   :  { %878 = vsyncpa [#allocation6], 1 }
 0x189   :  { %879 = vsyncpa [#allocation4], 1 }

</bundles_post_ra>
